<compile_context>
chip_gen: v7x
topology: tpu7x:2x2x1
jax: 0.10.0
libtpu: 0.0.40
codegen_flags: <defaults>
</compile_context>

<pallas_src>
import functools

import jax
import jax.numpy as jnp
from jax import lax
from jax.experimental import pallas as pl
from jax.experimental.pallas import tpu as pltpu


def _apply_activation(h, activation):
    """Static (compile-time) activation choice, matching CGenerator."""
    if activation == "tanh":
        return jnp.tanh(h)
    if activation == "leakyrelu":
        return jnp.where(h >= 0.0, h, 0.2 * h)
    if activation == "swish":
        return 2.0 * h * jax.nn.sigmoid(h)    # Swish(beta=1): 2*x*sigmoid(x)
    return jnp.maximum(h, 0.0)                # default: ReLU


def _cgen_kernel(z_ref, labels_ref, embed_ref, w_in_z_ref, w_in_e_ref,
                 b_in_ref, w_hid_ref, b_hid_ref, w_out_ref, b_out_ref,
                 out_ref, *, depth, n_classes, activation):
    # Per grid step:
    #   z:      (TB, Z)  f32        labels: (TB, 1) int32
    #   embed:  (C, E)   bf16       (embedding table)
    #   w_in_z: (Z, W)   bf16       w_in_e: (E, W) bf16     b_in: (1, W) f32
    #   w_hid:  (D, W, W) bf16      b_hid: (D, 1, W) f32
    #   w_out:  (W, F)   bf16       b_out: (1, F) f32
    #   out:    (TB, F)  f32
    tb = z_ref.shape[0]

    # --- embedding lookup as one_hot(labels) @ table (no dynamic gather) ---
    labels = labels_ref[...]                                        # (TB, 1)
    cls_iota = lax.broadcasted_iota(jnp.int32, (tb, n_classes), 1)  # (TB, C)
    onehot = (cls_iota == labels).astype(jnp.bfloat16)
    e = jnp.dot(onehot, embed_ref[...],
                preferred_element_type=jnp.float32)                 # (TB, E)

    # --- input layer over cat([z, e], -1), split into two matmuls ---
    h = jnp.dot(z_ref[...].astype(jnp.bfloat16), w_in_z_ref[...],
                preferred_element_type=jnp.float32)
    h = h + jnp.dot(e.astype(jnp.bfloat16), w_in_e_ref[...],
                    preferred_element_type=jnp.float32)
    h = _apply_activation(h + b_in_ref[...], activation)

    # --- hidden stack (depth is a compile-time constant: static unroll) ---
    for i in range(depth):
        h = jnp.dot(h.astype(jnp.bfloat16), w_hid_ref[i],
                    preferred_element_type=jnp.float32)
        h = _apply_activation(h + b_hid_ref[i], activation)

    # --- output layer + tanh ---
    o = jnp.dot(h.astype(jnp.bfloat16), w_out_ref[...],
                preferred_element_type=jnp.float32)
    out_ref[...] = jnp.tanh(o + b_out_ref[...]).astype(out_ref.dtype)


def cgenerator_forward(z, labels, params, *, depth, n_classes,
                       activation="relu", tile_b=None):
    """z: (B, z_dim) f32, labels: (B,) int32.  Returns (B, num_features) f32."""
    B, Z = z.shape
    C, E = params["embed"].shape
    W = params["w_in_z"].shape[1]
    F = params["w_out"].shape[1]
    assert C == n_classes

    if tile_b is None:
        # Large batch tiles amortize per-grid-step overhead and fill the MXU
        # M dimension; the full parameter set is tiny so VMEM is no constraint.
        tile_b = min(B, 512)
    assert B % tile_b == 0, "batch must be divisible by tile_b"

    labels2d = labels.reshape(B, 1).astype(jnp.int32)

    kernel = functools.partial(_cgen_kernel, depth=depth, n_classes=n_classes,
                               activation=activation.lower())
    grid = (B // tile_b,)

    # NOTE: the parameter blocks have constant index maps; they could use
    # pipeline_mode=pl.Buffered(1) to drop the second buffer, but at ~100 KiB
    # total the default double-buffering is negligible, so we keep it simple.
    in_specs = [
        pl.BlockSpec((tile_b, Z), lambda i: (i, 0)),            # z tile
        pl.BlockSpec((tile_b, 1), lambda i: (i, 0)),            # labels tile
        pl.BlockSpec((n_classes, E), lambda i: (0, 0)),         # embed table
        pl.BlockSpec((Z, W), lambda i: (0, 0)),                 # w_in (z part)
        pl.BlockSpec((E, W), lambda i: (0, 0)),                 # w_in (e part)
        pl.BlockSpec((1, W), lambda i: (0, 0)),                 # b_in
        pl.BlockSpec((depth, W, W), lambda i: (0, 0, 0)),       # w_hid
        pl.BlockSpec((depth, 1, W), lambda i: (0, 0, 0)),       # b_hid
        pl.BlockSpec((W, F), lambda i: (0, 0)),                 # w_out
        pl.BlockSpec((1, F), lambda i: (0, 0)),                 # b_out
    ]
    out_specs = pl.BlockSpec((tile_b, F), lambda i: (i, 0))     # lane-dense

    return pl.pallas_call(
        kernel,
        out_shape=jax.ShapeDtypeStruct((B, F), jnp.float32),
        grid=grid,
        in_specs=in_specs,
        out_specs=out_specs,
        compiler_params=pltpu.CompilerParams(
            dimension_semantics=("parallel",)),
    )(z, labels2d, params["embed"], params["w_in_z"], params["w_in_e"],
      params["b_in"], params["w_hid"], params["b_hid"],
      params["w_out"], params["b_out"])


def init_params(key, z_dim, embed_size, width, depth, num_features, n_classes):
    """Synthetic init: Embedding ~ N(0,1); Linear ~ U(+/-1/sqrt(fan_in)).
    Matmul weights stored bf16 (MXU path), biases f32."""
    ks = jax.random.split(key, 8)

    def unif(k, shape, fan_in, dtype=jnp.float32):
        bound = 1.0 / jnp.sqrt(float(fan_in))
        return jax.random.uniform(k, shape, jnp.float32, -bound, bound).astype(dtype)

    in_fan = z_dim + embed_size
    return {
        "embed": jax.random.normal(
            ks[0], (n_classes, embed_size), jnp.float32).astype(jnp.bfloat16),
        "w_in_z": unif(ks[1], (z_dim, width), in_fan, jnp.bfloat16),
        "w_in_e": unif(ks[2], (embed_size, width), in_fan, jnp.bfloat16),
        "b_in":   unif(ks[3], (1, width), in_fan),
        "w_hid":  unif(ks[4], (depth, width, width), width, jnp.bfloat16),
        "b_hid":  unif(ks[5], (depth, 1, width), width),
        "w_out":  unif(ks[6], (width, num_features), width, jnp.bfloat16),
        "b_out":  unif(ks[7], (1, num_features), width),
    }


def reference_forward(z, labels, params, depth, activation="relu"):
    """Pure-JAX f32 reference of CGenerator.forward (normalize=False)."""
    act = lambda h: _apply_activation(h, activation.lower())
    e = params["embed"].astype(jnp.float32)[labels]            # (B, E)
    h = act(z @ params["w_in_z"].astype(jnp.float32)
            + e @ params["w_in_e"].astype(jnp.float32) + params["b_in"])
    for i in range(depth):
        h = act(h @ params["w_hid"][i].astype(jnp.float32) + params["b_hid"][i])
    return jnp.tanh(h @ params["w_out"].astype(jnp.float32) + params["b_out"])


if __name__ == "__main__":
    # CGenerator(z_dim=64, num_features=128, depth=3, width=128,
    #            n_classes=10, embed_size=64, activation='Relu', normalize=False)
    z_dim, embed_size, width, depth = 64, 64, 128, 3
    num_features, n_classes = 128, 10
    batch, tile_b = 256, 128            # grid = (2,) -> both v7x TCs get work

    key = jax.random.PRNGKey(0)
    kz, kl, kp = jax.random.split(key, 3)
    z = jax.random.normal(kz, (batch, z_dim), dtype=jnp.float32)
    labels = jax.random.randint(kl, (batch,), 0, n_classes, dtype=jnp.int32)
    params = init_params(kp, z_dim, embed_size, width, depth,
                         num_features, n_classes)

    out = cgenerator_forward(z, labels, params, depth=depth,
                             n_classes=n_classes, activation="relu",
                             tile_b=tile_b)
    out = jax.block_until_ready(out)

    ref = reference_forward(z, labels, params, depth, activation="relu")
    assert out.shape == (batch, num_features)
    # bf16 weights / bf16-cast activations with f32 accumulation vs. f32 ref.
    max_err = float(jnp.max(jnp.abs(out - ref)))
    assert jnp.allclose(out, ref, atol=3e-2, rtol=3e-2), max_err

    print("KERNEL_OK")
</pallas_src>

<mosaic_0001>
module attributes {stable_mosaic.version = 11 : i64} {
  func.func @_cgen_kernel(%arg0: i32, %arg1: memref<128x64xf32, #tpu.memory_space<vmem>>, %arg2: memref<128x1xi32, #tpu.memory_space<vmem>>, %arg3: memref<10x64xbf16, #tpu.memory_space<vmem>>, %arg4: memref<64x128xbf16, #tpu.memory_space<vmem>>, %arg5: memref<64x128xbf16, #tpu.memory_space<vmem>>, %arg6: memref<1x128xf32, #tpu.memory_space<vmem>>, %arg7: memref<3x128x128xbf16, #tpu.memory_space<vmem>>, %arg8: memref<3x1x128xf32, #tpu.memory_space<vmem>>, %arg9: memref<128x128xbf16, #tpu.memory_space<vmem>>, %arg10: memref<1x128xf32, #tpu.memory_space<vmem>>, %arg11: memref<128x128xf32, #tpu.memory_space<vmem>>) attributes {dimension_semantics = [#tpu.dimension_semantics<parallel>], iteration_bounds = array<i64: 2>, scalar_prefetch = 0 : i64, scratch_operands = 0 : i64, tpu.core_type = #tpu.core_type<tc>, window_params = [{transform_indices = @transform_0, window_bounds = array<i64: 128, 64>}, {transform_indices = @transform_1, window_bounds = array<i64: 128, 1>}, {pipeline_mode = #tpu.pipeline_mode<synchronous>, transform_indices = @transform_2, window_bounds = array<i64: 10, 64>}, {pipeline_mode = #tpu.pipeline_mode<synchronous>, transform_indices = @transform_3, window_bounds = array<i64: 64, 128>}, {pipeline_mode = #tpu.pipeline_mode<synchronous>, transform_indices = @transform_4, window_bounds = array<i64: 64, 128>}, {pipeline_mode = #tpu.pipeline_mode<synchronous>, transform_indices = @transform_5, window_bounds = array<i64: 1, 128>}, {pipeline_mode = #tpu.pipeline_mode<synchronous>, transform_indices = @transform_6, window_bounds = array<i64: 3, 128, 128>}, {pipeline_mode = #tpu.pipeline_mode<synchronous>, transform_indices = @transform_7, window_bounds = array<i64: 3, 1, 128>}, {pipeline_mode = #tpu.pipeline_mode<synchronous>, transform_indices = @transform_8, window_bounds = array<i64: 128, 128>}, {pipeline_mode = #tpu.pipeline_mode<synchronous>, transform_indices = @transform_9, window_bounds = array<i64: 1, 128>}, {transform_indices = @transform_10, window_bounds = array<i64: 128, 128>}]} {
    %c0 = arith.constant 0 : index
    %c0_0 = arith.constant 0 : index
    %0 = vector.load %arg2[%c0, %c0_0] : memref<128x1xi32, #tpu.memory_space<vmem>>, vector<128x1xi32>
    %1 = tpu.iota {dimensions = array<i32: 1>} : vector<128x10xi32>
    %2 = vector.broadcast %0 : vector<128x1xi32> to vector<128x10xi32>
    %3 = arith.cmpi eq, %1, %2 : vector<128x10xi32>
    %4 = arith.extui %3 : vector<128x10xi1> to vector<128x10xi32>
    %5 = arith.sitofp %4 : vector<128x10xi32> to vector<128x10xf32>
    %6 = arith.truncf %5 : vector<128x10xf32> to vector<128x10xbf16>
    %c0_1 = arith.constant 0 : index
    %c0_2 = arith.constant 0 : index
    %7 = vector.load %arg3[%c0_1, %c0_2] : memref<10x64xbf16, #tpu.memory_space<vmem>>, vector<10x64xbf16>
    %cst = arith.constant dense<0.000000e+00> : vector<128x64xf32>
    %8 = tpu.matmul %6, %7, %cst {dimension_numbers = #tpu.dot_dimension_numbers<[1], [0], [0], [1], [0, 0, 1, 1], [], []>} : vector<128x10xbf16>, vector<10x64xbf16>, vector<128x64xf32> -> vector<128x64xf32>
    %c0_3 = arith.constant 0 : index
    %c0_4 = arith.constant 0 : index
    %9 = vector.load %arg1[%c0_3, %c0_4] : memref<128x64xf32, #tpu.memory_space<vmem>>, vector<128x64xf32>
    %10 = arith.truncf %9 : vector<128x64xf32> to vector<128x64xbf16>
    %c0_5 = arith.constant 0 : index
    %c0_6 = arith.constant 0 : index
    %11 = vector.load %arg4[%c0_5, %c0_6] : memref<64x128xbf16, #tpu.memory_space<vmem>>, vector<64x128xbf16>
    %cst_7 = arith.constant dense<0.000000e+00> : vector<128x128xf32>
    %12 = tpu.matmul %10, %11, %cst_7 {dimension_numbers = #tpu.dot_dimension_numbers<[1], [0], [0], [1], [0, 0, 1, 1], [], []>} : vector<128x64xbf16>, vector<64x128xbf16>, vector<128x128xf32> -> vector<128x128xf32>
    %13 = arith.truncf %8 : vector<128x64xf32> to vector<128x64xbf16>
    %c0_8 = arith.constant 0 : index
    %c0_9 = arith.constant 0 : index
    %14 = vector.load %arg5[%c0_8, %c0_9] : memref<64x128xbf16, #tpu.memory_space<vmem>>, vector<64x128xbf16>
    %cst_10 = arith.constant dense<0.000000e+00> : vector<128x128xf32>
    %15 = tpu.matmul %13, %14, %cst_10 {dimension_numbers = #tpu.dot_dimension_numbers<[1], [0], [0], [1], [0, 0, 1, 1], [], []>} : vector<128x64xbf16>, vector<64x128xbf16>, vector<128x128xf32> -> vector<128x128xf32>
    %16 = arith.addf %12, %15 : vector<128x128xf32>
    %c0_11 = arith.constant 0 : index
    %c0_12 = arith.constant 0 : index
    %17 = vector.load %arg6[%c0_11, %c0_12] : memref<1x128xf32, #tpu.memory_space<vmem>>, vector<1x128xf32>
    %18 = vector.broadcast %17 : vector<1x128xf32> to vector<128x128xf32>
    %19 = arith.addf %16, %18 : vector<128x128xf32>
    %cst_13 = arith.constant 0.000000e+00 : f32
    %20 = vector.broadcast %cst_13 : f32 to vector<128x128xf32>
    %21 = arith.maximumf %19, %20 : vector<128x128xf32>
    %22 = arith.truncf %21 : vector<128x128xf32> to vector<128x128xbf16>
    %c0_14 = arith.constant 0 : index
    %c0_15 = arith.constant 0 : index
    %c0_16 = arith.constant 0 : index
    %23 = vector.load %arg7[%c0_14, %c0_15, %c0_16] : memref<3x128x128xbf16, #tpu.memory_space<vmem>>, vector<1x128x128xbf16>
    %24 = vector.shape_cast %23 : vector<1x128x128xbf16> to vector<128x128xbf16>
    %cst_17 = arith.constant dense<0.000000e+00> : vector<128x128xf32>
    %25 = tpu.matmul %22, %24, %cst_17 {dimension_numbers = #tpu.dot_dimension_numbers<[1], [0], [0], [1], [0, 0, 1, 1], [], []>} : vector<128x128xbf16>, vector<128x128xbf16>, vector<128x128xf32> -> vector<128x128xf32>
    %c0_18 = arith.constant 0 : index
    %c0_19 = arith.constant 0 : index
    %c0_20 = arith.constant 0 : index
    %26 = vector.load %arg8[%c0_18, %c0_19, %c0_20] : memref<3x1x128xf32, #tpu.memory_space<vmem>>, vector<1x1x128xf32>
    %27 = vector.shape_cast %26 : vector<1x1x128xf32> to vector<1x128xf32>
    %28 = vector.broadcast %27 : vector<1x128xf32> to vector<128x128xf32>
    %29 = arith.addf %25, %28 : vector<128x128xf32>
    %cst_21 = arith.constant 0.000000e+00 : f32
    %30 = vector.broadcast %cst_21 : f32 to vector<128x128xf32>
    %31 = arith.maximumf %29, %30 : vector<128x128xf32>
    %32 = arith.truncf %31 : vector<128x128xf32> to vector<128x128xbf16>
    %c1 = arith.constant 1 : index
    %c0_22 = arith.constant 0 : index
    %c0_23 = arith.constant 0 : index
    %33 = vector.load %arg7[%c1, %c0_22, %c0_23] : memref<3x128x128xbf16, #tpu.memory_space<vmem>>, vector<1x128x128xbf16>
    %34 = vector.shape_cast %33 : vector<1x128x128xbf16> to vector<128x128xbf16>
    %cst_24 = arith.constant dense<0.000000e+00> : vector<128x128xf32>
    %35 = tpu.matmul %32, %34, %cst_24 {dimension_numbers = #tpu.dot_dimension_numbers<[1], [0], [0], [1], [0, 0, 1, 1], [], []>} : vector<128x128xbf16>, vector<128x128xbf16>, vector<128x128xf32> -> vector<128x128xf32>
    %c1_25 = arith.constant 1 : index
    %c0_26 = arith.constant 0 : index
    %c0_27 = arith.constant 0 : index
    %36 = vector.load %arg8[%c1_25, %c0_26, %c0_27] : memref<3x1x128xf32, #tpu.memory_space<vmem>>, vector<1x1x128xf32>
    %37 = vector.shape_cast %36 : vector<1x1x128xf32> to vector<1x128xf32>
    %38 = vector.broadcast %37 : vector<1x128xf32> to vector<128x128xf32>
    %39 = arith.addf %35, %38 : vector<128x128xf32>
    %cst_28 = arith.constant 0.000000e+00 : f32
    %40 = vector.broadcast %cst_28 : f32 to vector<128x128xf32>
    %41 = arith.maximumf %39, %40 : vector<128x128xf32>
    %42 = arith.truncf %41 : vector<128x128xf32> to vector<128x128xbf16>
    %c2 = arith.constant 2 : index
    %c0_29 = arith.constant 0 : index
    %c0_30 = arith.constant 0 : index
    %43 = vector.load %arg7[%c2, %c0_29, %c0_30] : memref<3x128x128xbf16, #tpu.memory_space<vmem>>, vector<1x128x128xbf16>
    %44 = vector.shape_cast %43 : vector<1x128x128xbf16> to vector<128x128xbf16>
    %cst_31 = arith.constant dense<0.000000e+00> : vector<128x128xf32>
    %45 = tpu.matmul %42, %44, %cst_31 {dimension_numbers = #tpu.dot_dimension_numbers<[1], [0], [0], [1], [0, 0, 1, 1], [], []>} : vector<128x128xbf16>, vector<128x128xbf16>, vector<128x128xf32> -> vector<128x128xf32>
    %c2_32 = arith.constant 2 : index
    %c0_33 = arith.constant 0 : index
    %c0_34 = arith.constant 0 : index
    %46 = vector.load %arg8[%c2_32, %c0_33, %c0_34] : memref<3x1x128xf32, #tpu.memory_space<vmem>>, vector<1x1x128xf32>
    %47 = vector.shape_cast %46 : vector<1x1x128xf32> to vector<1x128xf32>
    %48 = vector.broadcast %47 : vector<1x128xf32> to vector<128x128xf32>
    %49 = arith.addf %45, %48 : vector<128x128xf32>
    %cst_35 = arith.constant 0.000000e+00 : f32
    %50 = vector.broadcast %cst_35 : f32 to vector<128x128xf32>
    %51 = arith.maximumf %49, %50 : vector<128x128xf32>
    %52 = arith.truncf %51 : vector<128x128xf32> to vector<128x128xbf16>
    %c0_36 = arith.constant 0 : index
    %c0_37 = arith.constant 0 : index
    %53 = vector.load %arg9[%c0_36, %c0_37] : memref<128x128xbf16, #tpu.memory_space<vmem>>, vector<128x128xbf16>
    %cst_38 = arith.constant dense<0.000000e+00> : vector<128x128xf32>
    %54 = tpu.matmul %52, %53, %cst_38 {dimension_numbers = #tpu.dot_dimension_numbers<[1], [0], [0], [1], [0, 0, 1, 1], [], []>} : vector<128x128xbf16>, vector<128x128xbf16>, vector<128x128xf32> -> vector<128x128xf32>
    %c0_39 = arith.constant 0 : index
    %c0_40 = arith.constant 0 : index
    %55 = vector.load %arg10[%c0_39, %c0_40] : memref<1x128xf32, #tpu.memory_space<vmem>>, vector<1x128xf32>
    %56 = vector.broadcast %55 : vector<1x128xf32> to vector<128x128xf32>
    %57 = arith.addf %54, %56 : vector<128x128xf32>
    %58 = math.tanh %57 : vector<128x128xf32>
    %c0_41 = arith.constant 0 : index
    %c0_42 = arith.constant 0 : index
    %59 = vector.load %arg11[%c0_41, %c0_42] : memref<128x128xf32, #tpu.memory_space<vmem>>, vector<128x128xf32>
    tpu.vector_store %arg11[%c0_41, %c0_42], %58 {strides = array<i32>} : memref<128x128xf32, #tpu.memory_space<vmem>>, vector<128x128xf32>,
    return
  }
  func.func @transform_0(%arg0: i32) -> (i32, i32) {
    %c0_i32 = arith.constant 0 : i32
    %c0_i32_0 = arith.constant 0 : i32
    return %arg0, %c0_i32 : i32, i32
  }
  func.func @transform_1(%arg0: i32) -> (i32, i32) {
    %c0_i32 = arith.constant 0 : i32
    %c0_i32_0 = arith.constant 0 : i32
    return %arg0, %c0_i32 : i32, i32
  }
  func.func @transform_2(%arg0: i32) -> (i32, i32) {
    %c0_i32 = arith.constant 0 : i32
    %c0_i32_0 = arith.constant 0 : i32
    %c0_i32_1 = arith.constant 0 : i32
    return %c0_i32, %c0_i32_0 : i32, i32
  }
  func.func @transform_3(%arg0: i32) -> (i32, i32) {
    %c0_i32 = arith.constant 0 : i32
    %c0_i32_0 = arith.constant 0 : i32
    %c0_i32_1 = arith.constant 0 : i32
    return %c0_i32, %c0_i32_0 : i32, i32
  }
  func.func @transform_4(%arg0: i32) -> (i32, i32) {
    %c0_i32 = arith.constant 0 : i32
    %c0_i32_0 = arith.constant 0 : i32
    %c0_i32_1 = arith.constant 0 : i32
    return %c0_i32, %c0_i32_0 : i32, i32
  }
  func.func @transform_5(%arg0: i32) -> (i32, i32) {
    %c0_i32 = arith.constant 0 : i32
    %c0_i32_0 = arith.constant 0 : i32
    %c0_i32_1 = arith.constant 0 : i32
    return %c0_i32, %c0_i32_0 : i32, i32
  }
  func.func @transform_6(%arg0: i32) -> (i32, i32, i32) {
    %c0_i32 = arith.constant 0 : i32
    %c0_i32_0 = arith.constant 0 : i32
    %c0_i32_1 = arith.constant 0 : i32
    %c0_i32_2 = arith.constant 0 : i32
    return %c0_i32, %c0_i32_0, %c0_i32_1 : i32, i32, i32
  }
  func.func @transform_7(%arg0: i32) -> (i32, i32, i32) {
    %c0_i32 = arith.constant 0 : i32
    %c0_i32_0 = arith.constant 0 : i32
    %c0_i32_1 = arith.constant 0 : i32
    %c0_i32_2 = arith.constant 0 : i32
    return %c0_i32, %c0_i32_0, %c0_i32_1 : i32, i32, i32
  }
  func.func @transform_8(%arg0: i32) -> (i32, i32) {
    %c0_i32 = arith.constant 0 : i32
    %c0_i32_0 = arith.constant 0 : i32
    %c0_i32_1 = arith.constant 0 : i32
    return %c0_i32, %c0_i32_0 : i32, i32
  }
  func.func @transform_9(%arg0: i32) -> (i32, i32) {
    %c0_i32 = arith.constant 0 : i32
    %c0_i32_0 = arith.constant 0 : i32
    %c0_i32_1 = arith.constant 0 : i32
    return %c0_i32, %c0_i32_0 : i32, i32
  }
  func.func @transform_10(%arg0: i32) -> (i32, i32) {
    %c0_i32 = arith.constant 0 : i32
    %c0_i32_0 = arith.constant 0 : i32
    return %arg0, %c0_i32 : i32, i32
  }
}

</mosaic_0001>

<bundles_post_ra>
// kernel: tpu_custom_call.1
= control target key start
LH: loop header
LB: loop body
LE: loop exit
PB: predicated region body
PF: predicated region fallthrough
CT: control target
= control target key end

     0   :  { %15 = vsyncpa [#allocation3], 0  ;;  %s3017_s0 = inlined_call_operand.vmem [shape: f32[256,64], index: 0, kind: input, shape index: {}]   ;;  %s3018_s1 = inlined_call_operand.vmem [shape: s32[256,1], index: 1, kind: input, shape index: {}]   ;;  %s3019_s2 = inlined_call_operand.vmem [shape: bf16[10,64], index: 2, kind: input, shape index: {}]   ;;  %s3020_s3 = inlined_call_operand.vmem [shape: bf16[64,128], index: 3, kind: input, shape index: {}]   ;;  %s3021_s4 = inlined_call_operand.vmem [shape: bf16[64,128], index: 4, kind: input, shape index: {}]   ;;  %s3022_s5 = inlined_call_operand.vmem [shape: f32[1,128], index: 5, kind: input, shape index: {}]   ;;  %s3023_s6 = inlined_call_operand.vmem [shape: bf16[3,128,128], index: 6, kind: input, shape index: {}]   ;;  %s3024_s7 = inlined_call_operand.vmem [shape: f32[3,1,128], index: 7, kind: input, shape index: {}]   ;;  %s3025_s8 = inlined_call_operand.vmem [shape: bf16[128,128], index: 8, kind: input, shape index: {}]   ;;  %s3026_s9 = inlined_call_operand.vmem [shape: f32[1,128], index: 9, kind: input, shape index: {}]   ;;  %s3027_s10 = inlined_call_operand.hbm [shape: f32[256,128], index: 10, kind: output, shape index: {}]  }
   0x1   :  { %17 = vsyncpa [#allocation3 + $0x1], 0  ;;  %s2594_s13 = smov 0   ;;  %s2596_s14 = smov 0  }
   0x2   :  { %s2598_s15 = smov 0   ;;  %s2600_s16 = smov 0  }
   0x3 LB: > { %s2615_s17 = sadd.s32 4294967295, %s2532_s16   ;;  %s1893_s18 = sadd.s32 4294967294, %s2532_s16   ;;  %s2532_s16 = sphi %s2600_s16, %s3033_s16   ;;  %s2528_s15 = sphi %s2598_s15, %s3032_s15   ;;  %s2524_s14 = sphi %s2596_s14, %s3031_s14   ;;  %s2520_s13 = sphi %s2594_s13, %s3030_s13  }
   0x4   : > { %s2619_s19 = sadd.s32 1, %s2532_s16   ;;  %s250_s20 = sadd.s32 1, %s2528_s15 }
   0x5   : > { %s247_s21 = ssub.s32 %s2532_s16, %s2619_s19  ;;  %p260_p0 = scmp.ne.s32.totalorder %s2528_s15, %s2524_s14 }
   0x6   : > { %p248_p1 = scmp.eq.s32.totalorder %s247_s21, 0  ;;  %p261_p2 = scmp.eq.s32.totalorder %s2615_s17, 1 }
   0x7   : > { %p266_p3 = scmp.ne.s32.totalorder %s2524_s14, %s2520_s13  ;;  %p267_p4 = scmp.eq.s32.totalorder %s1893_s18, 1 }
   0x8   : > { %s2630_s22 = scalar_select %p248_p1, %s2528_s15, %s250_s20  }
   0x9   : > { %p2632_p5 = por %p261_p2, %p260_p0  ;;  %p2636_p6 = por %p267_p4, %p266_p3 }
   0xa   : > { %p1896_p7 = scmp.ge.s32.totalorder %s2532_s16, 1  ;;  %p327_p8 = scmp.lt.s32.totalorder %s2532_s16, 3 }
   0xc   : > { %p328_p9 = pnand %p1896_p7, %p327_p8 }
   0xd   : > { %s1898_s25 = sshll.u32 (!%p328_p9), %s2615_s17, 4  ;;  %v2534_v0 = vmov (!%p328_p9), 0   ;;  %v2397_v7 = vld [vmem:[%s3019_s2] sm:$0x1f] (!%p328_p9)   ;;  %vm538_vm0 = vcmask (!%p328_p9), 1044480   ;;  %v2399_v20 = vld [vmem:[%s3021_s4 + $0x8] sm:$0xff] (!%p328_p9)   ;;  %v400_v22 = vlaneseq (!%p328_p9) }
   0xe   : > { %331 = sbr.rel (%p328_p9) target bundleno = 1567 (0x61f), region = 60  ;;  %2396 = vset.pattern.permute.xlu1 (!%p328_p9), %v2534_v0  ;;  %2395 = vset.pattern.permute.xlu0 (!%p328_p9), %v2534_v0  ;;  %p371_p10 = scmp.lt.s32.totalorder (!%p328_p9), %s1898_s25, 31  ;;  %v540_v8 = vsel (!%p328_p9), %vm538_vm0, %v2397_v7, 0  ;;  %v2398_v19 = vld [vmem:[%s3021_s4] sm:$0xff] (!%p328_p9)   ;;  %v2400_v21 = vld [vmem:[%s3021_s4 + $0x10] sm:$0xff] (!%p328_p9)   ;;  %vm513_vm5 = vcmask (!%p328_p9), 80896  }
   0xf   : > { %2351 = vmatprep.subr.msk.bf16.mxu0 (!%p328_p9), %vm538_vm0, %v2397_v7  ;;  %2143 = vmatprep.subr.bf16.mxu1 (!%p328_p9), %v2398_v19  ;;  %v2681_v23 = vand.u32 (!%p328_p9), 127, %v400_v22  ;;  %v2535_v28 = vmov (!%p328_p9), 0.0   ;;  %v2410_v7 = vld [vmem:[%s3023_s6 + $0x20] sm:$0xff] (!%p328_p9)   ;;  %s367_s12 = sand.u32 (!%p328_p9), 1, %s2524_s14   ;;  %s2536_s30 = smov (!%p328_p9), [#allocation2]  }
  0x10   : > { %2126 = vmatpush3.bf16.msra.mxu0 (!%p328_p9), %v540_v8  ;;  %2144 = vmatpush3.bf16.msra.mxu1 (!%p328_p9), %v2398_v19  ;;  %v2411_v8 = vld [vmem:[%s3023_s6 + $0x28] sm:$0xff] (!%p328_p9)   ;;  %s1897_s18 = sshll.u32 (!%p328_p9), %s367_s12, 7  ;;  %s2474_s11 = sshll.u32 (!%p328_p9), %s2536_s30, 4  ;;  %s2475_s11 = int_to_ptr.vmem [resolvable:$false] %s2474_s11 }
  0x11   : > { %2145 = vmatprep.subr.bf16.mxu1 (!%p328_p9), %v2399_v20  ;;  %s2939_s20 = scalar_lea.vmem (!%p328_p9), [#allocation2], %s1897_s18  ;;  %s2476_s18 = scalar_lea.vmem (!%p328_p9), %s2475_s11, 4096 }
  0x14   : > { %2146 = vmatpush3.bf16.msra.mxu1 (!%p328_p9), %v2399_v20 }
  0x15   : > { %s3035_s25 = smov (!%p371_p10, %s1898_s25), 31  ;;  %2147 = vmatprep.subr.bf16.mxu1 %v2400_v21 }
  0x16   : > { %s1899_s26 = sshll.u32 %s3035_s25, 3  ;;  %s1819_s25 = sshll.u32 %s2939_s20, 4  ;;  %s2969_s25 = int_to_ptr.vmem [resolvable:$true] %s1819_s25 }
  0x17   : > { %s2651_s29 = scalar_lea.vmem %s3018_s1, %s1899_s26  ;;  %s2749_s21 = scalar_lea.vmem %s3017_s0, %s1899_s26 }
  0x18   : > { %v386_v1 = vld [vmem:[%s2651_s29 + $0x10] sm:$0xff]  ;;  %v384_v2 = vld [vmem:[%s2651_s29] sm:$0xff]  ;;  %v387_v3 = vld [vmem:[%s2651_s29 + $0x18] sm:$0xff]  ;;  %2148 = vmatpush3.bf16.msra.mxu1 %v2400_v21  ;;  %p2477_p0 = scmp.lt.s32.totalorder %s2969_s25, %s2475_s11 }
  0x19   : > { %409 = vperm.xlu1 %2396, %v386_v1   ;;  %403 = vperm.xlu0 %2395, %v384_v2   ;;  %v385_v4 = vld [vmem:[%s2651_s29 + $0x8] sm:$0xff]  ;;  %v388_v6 = vld [vmem:[%s2651_s29 + $0x20] sm:$0xff]  ;;  %v391_v9 = vld [vmem:[%s2651_s29 + $0x38] sm:$0xff] }
  0x1a   : > { %v389_v5 = vld [vmem:[%s2651_s29 + $0x28] sm:$0xff]  ;;  %v390_v10 = vld [vmem:[%s2651_s29 + $0x30] sm:$0xff]  ;;  %v392_v12 = vld [vmem:[%s2651_s29 + $0x40] sm:$0xff] }
  0x1b   : > { %v393_v11 = vld [vmem:[%s2651_s29 + $0x48] sm:$0xff]  ;;  %v395_v13 = vld [vmem:[%s2651_s29 + $0x58] sm:$0xff]  ;;  %v394_v14 = vld [vmem:[%s2651_s29 + $0x50] sm:$0xff] }
  0x1c   : > { %v397_v15 = vld [vmem:[%s2651_s29 + $0x68] sm:$0xff]  ;;  %v396_v16 = vld [vmem:[%s2651_s29 + $0x60] sm:$0xff]  ;;  %v399_v17 = vld [vmem:[%s2651_s29 + $0x78] sm:$0xff] }
  0x1d   : > { %412 = vperm.xlu1 %2396, %v387_v3   ;;  %406 = vperm.xlu0 %2395, %v385_v4   ;;  %v398_v18 = vld [vmem:[%s2651_s29 + $0x70] sm:$0xff]  ;;  %v2401_v1 = vld [vmem:[%s3021_s4 + $0x18] sm:$0xff]   ;;  %v2402_v2 = vld [vmem:[%s3020_s3] sm:$0xff]   ;;  %s2470_s29 = scalar_lea.vmem %s2969_s25, 2048 }
  0x1e   : > { %2149 = vmatprep.subr.bf16.mxu1 %v2401_v1  ;;  %v2406_v3 = vld [vmem:[%s3023_s6] sm:$0xff]   ;;  %v2407_v4 = vld [vmem:[%s3023_s6 + $0x8] sm:$0xff]   ;;  %p2471_p11 = scmp.ne.s32.totalorder %s2969_s25, %s2470_s29  ;;  %p2478_p1 = scmp.lt.s32.totalorder %s2476_s18, %s2470_s29 }
  0x1f   : > { %2150 = vmatpush3.bf16.msra.mxu1 %v2401_v1  ;;  %2191 = vmatprep.subr.bf16.mxu0 %v2406_v3 }
  0x20   : > { %2167 = vmatprep.subr.bf16.mxu1 %v2402_v2  ;;  %p2472_p12 = pnand %p2471_p11, %p2632_p5  ;;  %p2479_p2 = por %p2478_p1, %p2477_p0 }
  0x21   : > { %418 = vperm.xlu1 %2396, %v389_v5   ;;  %415 = vperm.xlu0 %2395, %v388_v6   ;;  %v2408_v5 = vld [vmem:[%s3023_s6 + $0x10] sm:$0xff]   ;;  %v2409_v6 = vld [vmem:[%s3023_s6 + $0x18] sm:$0xff]  }
  0x22   : > { %p2473_p13 = pneg %p2472_p12 }
  0x24   : > { %p2480_p3 = pnand %p2479_p2, %p2473_p13 }
  0x25   : > { %424 = vperm.xlu1 %2396, %v391_v9   ;;  %421 = vperm.xlu0 %2395, %v390_v10  }
  0x29   : > { %430 = vperm.xlu1 %2396, %v393_v11   ;;  %427 = vperm.xlu0 %2395, %v392_v12  }
  0x2d   : > { %436 = vperm.xlu1 %2396, %v395_v13   ;;  %433 = vperm.xlu0 %2395, %v394_v14  }
  0x31   : > { %442 = vperm.xlu1 %2396, %v397_v15   ;;  %439 = vperm.xlu0 %2395, %v396_v16   ;;  %v2403_v15 = vld [vmem:[%s3020_s3 + $0x8] sm:$0xff]  }
  0x35   : > { %448 = vperm.xlu1 %2396, %v399_v17   ;;  %445 = vperm.xlu0 %2395, %v398_v18   ;;  %v2404_v18 = vld [vmem:[%s3020_s3 + $0x10] sm:$0xff]  }
  0x98   : > { %v410_v24 = vpop.permute.xlu1 %409  ;;  %v404_v25 = vpop.permute.xlu0 %403 }
  0x99   : > { %vm452_vm1 = vcmp.eq.s32.totalorder %v2681_v23, %v410_v24  ;;  %vm450_vm2 = vcmp.eq.s32.totalorder %v2681_v23, %v404_v25 }
  0x9a   : > { %v1904_v29 = vsel %vm452_vm1, 1.0, %v2535_v28  ;;  %v1902_v30 = vsel %vm450_vm2, 1.0, %v2535_v28  ;;  %vm711_vm2 = vcmask 523264  }
  0x9c   : > { %v413_v26 = vpop.permute.xlu1 %412  ;;  %v407_v27 = vpop.permute.xlu0 %406 }
  0x9d   : > { %vm453_vm3 = vcmp.eq.s32.totalorder %v2681_v23, %v413_v26  ;;  %vm451_vm4 = vcmp.eq.s32.totalorder %v2681_v23, %v407_v27 }
  0x9e   : > { %v1905_v31 = vsel %vm453_vm3, 1.0, %v2535_v28  ;;  %v1903_v32 = vsel %vm451_vm4, 1.0, %v2535_v28 }
  0x9f   : > { %v499_v33 = vpack.c.bf16 %v1905_v31, %v1904_v29  ;;  %v498_v34 = vpack.c.bf16 %v1903_v32, %v1902_v30  ;;  %v639_v32 = vld [vmem:[%s2749_s21] sm:$0xff] }
  0xa0   : > { %v419_v35 = vpop.permute.xlu1 %418  ;;  %v416_v36 = vpop.permute.xlu0 %415 }
  0xa1   : > { %vm455_vm6 = vcmp.eq.s32.totalorder %v2681_v23, %v419_v35  ;;  %vm454_vm7 = vcmp.eq.s32.totalorder %v2681_v23, %v416_v36  ;;  %2127 = vmatprep.mubr.msk.bf16.mxu0 %vm513_vm5, %v498_v34 }
  0xa2   : > { %v1907_v37 = vsel %vm455_vm6, 1.0, %v2535_v28  ;;  %v1906_v38 = vsel %vm454_vm7, 1.0, %v2535_v28  ;;  %2128 = vmatmul.mubr.msk.bf16.vlgmr.msra.gmra.mrb[0].mxu0 %vm513_vm5, %v499_v33  ;;  %v640_v33 = vld [vmem:[%s2749_s21 + $0x8] sm:$0xff] }
  0xa3   : > { %v500_v39 = vpack.c.bf16 %v1907_v37, %v1906_v38  ;;  %2192 = vmatpush3.bf16.msra.mxu0 %v2406_v3  ;;  %v655_v38 = vpack.c.bf16 %v640_v33, %v639_v32  ;;  %v2417_v33 = vld [vmem:[%s3023_s6 + $0x58] sm:$0xff]  }
  0xa4   : > { %v425_v40 = vpop.permute.xlu1 %424  ;;  %v422_v41 = vpop.permute.xlu0 %421  ;;  %2193 = vmatprep.subr.bf16.mxu0 %v2407_v4 }
  0xa5   : > { %vm457_vm8 = vcmp.eq.s32.totalorder %v2681_v23, %v425_v40  ;;  %vm456_vm9 = vcmp.eq.s32.totalorder %v2681_v23, %v422_v41  ;;  %2131 = vmatprep.mubr.msk.bf16.mxu0 %vm513_vm5, %v500_v39  ;;  %v641_v39 = vld [vmem:[%s2749_s21 + $0x10] sm:$0xff]  ;;  %v642_v40 = vld [vmem:[%s2749_s21 + $0x18] sm:$0xff]  ;;  %v643_v41 = vld [vmem:[%s2749_s21 + $0x20] sm:$0xff] }
  0xa6   : > { %v1909_v42 = vsel %vm457_vm8, 1.0, %v2535_v28  ;;  %v1908_v43 = vsel %vm456_vm9, 1.0, %v2535_v28 }
  0xa7   : > { %v501_v44 = vpack.c.bf16 %v1909_v42, %v1908_v43  ;;  %2194 = vmatpush3.bf16.msra.mxu0 %v2407_v4  ;;  %v644_v42 = vld [vmem:[%s2749_s21 + $0x28] sm:$0xff]  ;;  %v656_v43 = vpack.c.bf16 %v642_v40, %v641_v39 }
  0xa8   : > { %v431_v45 = vpop.permute.xlu1 %430  ;;  %v428_v46 = vpop.permute.xlu0 %427  ;;  %2195 = vmatprep.subr.bf16.mxu0 %v2408_v5 }
  0xa9   : > { %vm459_vm10 = vcmp.eq.s32.totalorder %v2681_v23, %v431_v45  ;;  %vm458_vm11 = vcmp.eq.s32.totalorder %v2681_v23, %v428_v46  ;;  %v645_v45 = vld [vmem:[%s2749_s21 + $0x30] sm:$0xff]  ;;  %v646_v46 = vld [vmem:[%s2749_s21 + $0x38] sm:$0xff] }
  0xaa   : > { %v1911_v47 = vsel %vm459_vm10, 1.0, %v2535_v28  ;;  %v1910_v48 = vsel %vm458_vm11, 1.0, %v2535_v28  ;;  %2132 = vmatmul.mubr.msk.bf16.gmra.mrb[4].mxu0 %vm513_vm5, %v501_v44  ;;  %v657_v44 = vpack.c.bf16 %v644_v42, %v643_v41  ;;  %v2418_v41 = vld [vmem:[%s3023_s6 + $0x60] sm:$0xff]  }
  0xab   : > { %v502_v49 = vpack.c.bf16 %v1911_v47, %v1910_v48  ;;  %2196 = vmatpush3.bf16.msra.mxu0 %v2408_v5  ;;  %v647_v47 = vld [vmem:[%s2749_s21 + $0x40] sm:$0xff]  ;;  %v648_v48 = vld [vmem:[%s2749_s21 + $0x48] sm:$0xff] }
  0xac   : > { %v437_v50 = vpop.permute.xlu1 %436  ;;  %v434_v51 = vpop.permute.xlu0 %433  ;;  %2197 = vmatprep.subr.bf16.mxu0 %v2409_v6 }
  0xad   : > { %vm461_vm12 = vcmp.eq.s32.totalorder %v2681_v23, %v437_v50  ;;  %vm460_vm13 = vcmp.eq.s32.totalorder %v2681_v23, %v434_v51  ;;  %2135 = vmatprep.mubr.msk.bf16.mxu0 %vm513_vm5, %v502_v49  ;;  %v658_v49 = vpack.c.bf16 %v646_v46, %v645_v45  ;;  %v659_v50 = vpack.c.bf16 %v648_v48, %v647_v47  ;;  %v649_v51 = vld [vmem:[%s2749_s21 + $0x50] sm:$0xff] }
  0xae   : > { %v1913_v52 = vsel %vm461_vm12, 1.0, %v2535_v28  ;;  %v1912_v53 = vsel %vm460_vm13, 1.0, %v2535_v28 }
  0xaf   : > { %v503_v54 = vpack.c.bf16 %v1913_v52, %v1912_v53  ;;  %2198 = vmatpush3.bf16.msra.mxu0 %v2409_v6  ;;  %v650_v52 = vld [vmem:[%s2749_s21 + $0x58] sm:$0xff]  ;;  %v651_v53 = vld [vmem:[%s2749_s21 + $0x60] sm:$0xff] }
  0xb0   : > { %v443_v55 = vpop.permute.xlu1 %442  ;;  %v440_v56 = vpop.permute.xlu0 %439  ;;  %2199 = vmatprep.subr.bf16.mxu0 %v2410_v7 }
  0xb1   : > { %vm463_vm14 = vcmp.eq.s32.totalorder %v2681_v23, %v443_v55  ;;  %vm462_vm15 = vcmp.eq.s32.totalorder %v2681_v23, %v440_v56  ;;  %v660_v55 = vpack.c.bf16 %v650_v52, %v649_v51 }
  0xb2   : > { %v1915_v57 = vsel %vm463_vm14, 1.0, %v2535_v28  ;;  %v1914_v58 = vsel %vm462_vm15, 1.0, %v2535_v28  ;;  %2136 = vmatmul.mubr.msk.bf16.gmra.mrb[8].mxu0 %vm513_vm5, %v503_v54  ;;  %v652_v54 = vld [vmem:[%s2749_s21 + $0x68] sm:$0xff] }
  0xb3   : > { %v504_v59 = vpack.c.bf16 %v1915_v57, %v1914_v58  ;;  %2200 = vmatpush3.bf16.msra.mxu0 %v2410_v7  ;;  %v661_v56 = vpack.c.bf16 %v652_v54, %v651_v53  ;;  %v653_v57 = vld [vmem:[%s2749_s21 + $0x70] sm:$0xff]  ;;  %v654_v58 = vld [vmem:[%s2749_s21 + $0x78] sm:$0xff]  ;;  %s2027_s21 = sshll.u32 %s2615_s17, 11  ;;  %s2976_s17 = scalar_lea.sflag [#allocation3], %s367_s12 }
  0xb4   : > { %v449_v60 = vpop.permute.xlu1 %448  ;;  %v446_v61 = vpop.permute.xlu0 %445  ;;  %2201 = vmatprep.subr.bf16.mxu0 %v2411_v8  ;;  %s2967_s28 = scalar_lea.hbm %s3027_s10, %s2027_s21 }
  0xb5   : > { %vm465_vm0 = vcmp.eq.s32.totalorder %v2681_v23, %v449_v60  ;;  %vm464_vm1 = vcmp.eq.s32.totalorder %v2681_v23, %v446_v61  ;;  %2139 = vmatprep.mubr.msk.bf16.mxu0 %vm513_vm5, %v504_v59  ;;  %v2405_v23 = vld [vmem:[%s3020_s3 + $0x18] sm:$0xff]   ;;  %v662_v59 = vpack.c.bf16 %v654_v58, %v653_v57  ;;  %v2412_v60 = vld [vmem:[%s3023_s6 + $0x30] sm:$0xff]  }
  0xb6   : > { %v1917_v62 = vsel %vm465_vm0, 1.0, %v2535_v28  ;;  %v1916_v63 = vsel %vm464_vm1, 1.0, %v2535_v28  ;;  %v2413_v61 = vld [vmem:[%s3023_s6 + $0x38] sm:$0xff]  }
  0xb7   : > { %v505_v0 = vpack.c.bf16 %v1917_v62, %v1916_v63  ;;  %2202 = vmatpush3.bf16.msra.mxu0 %v2411_v8  ;;  %v2414_v62 = vld [vmem:[%s3023_s6 + $0x40] sm:$0xff]  }
  0xb8   : > { %2203 = vmatprep.subr.bf16.mxu0 %v2412_v60  ;;  %v2791_v63 = vld [vmem:[%s3022_s5] ss:$0 sm:$0xff] }
  0xba   : > { %2140 = vmatmul.mubr.msk.bf16.gmra.mrb[12].mxu0 %vm513_vm5, %v505_v0 }
  0xbb   : > { %2204 = vmatpush3.bf16.msra.mxu0 %v2412_v60 }
  0xbc   : > { %2205 = vmatprep.subr.bf16.mxu0 %v2413_v61 }
  0xbf   : > { %2206 = vmatpush3.bf16.msra.mxu0 %v2413_v61  ;;  %v2420_v61 = vld [vmem:[%s3023_s6 + $0x70] sm:$0xff]  }
  0xc0   : > { %2223 = vmatprep.subr.bf16.mxu0 %v2414_v62 }
 0x175   : > { %v2129_v9 = vpop.f32.mrb[0].mxu0 }
 0x176   : > { %v576_v10 = vpop.f32.mrb[1].mxu0 }
 0x177   : > { %v2130_v11 = vpop.f32.mrb[2].mxu0 }
 0x178   : > { %v672_v12 = vpack.c.bf16 %v2130_v11, %v2129_v9  ;;  %v579_v13 = vpop.f32.mrb[3].mxu0 }
 0x179   : > { %v671_v14 = vpack.c.bf16 %v579_v13, %v576_v10 }
 0x17b   : > { %2151 = vmatprep.mubr.msk.bf16.mxu1 %vm711_vm2, %v671_v14 }
 0x17c   : > { %2152 = vmatmul.mubr.msk.bf16.vlgmr.msra.gmra.mrb[0].mxu1 %vm711_vm2, %v672_v12 }
 0x17d   : > { %2168 = vmatpush3.bf16.msra.mxu1 %v2402_v2  ;;  %v2133_v16 = vpop.f32.mrb[4].mxu0 }
 0x17e   : > { %v592_v17 = vpop.f32.mrb[5].mxu0  ;;  %2169 = vmatprep.subr.bf16.mxu1 %v2403_v15 }
 0x17f   : > { %v2134_v19 = vpop.f32.mrb[6].mxu0 }
 0x180   : > { %v674_v20 = vpack.c.bf16 %v2134_v19, %v2133_v16  ;;  %v595_v21 = vpop.f32.mrb[7].mxu0 }
 0x181   : > { %v673_v22 = vpack.c.bf16 %v595_v21, %v592_v17  ;;  %2170 = vmatpush3.bf16.msra.mxu1 %v2403_v15  ;;  %v2415_v17 = vld [vmem:[%s3023_s6 + $0x48] sm:$0xff]  }
 0x182   : > { %2171 = vmatprep.subr.bf16.mxu1 %v2404_v18 }
 0x183   : > { %2155 = vmatprep.mubr.msk.bf16.mxu1 %vm711_vm2, %v673_v22 }
 0x184   : > { %2156 = vmatmul.mubr.msk.bf16.gmra.mrb[4].mxu1 %vm711_vm2, %v674_v20 }
 0x185   : > { %v2137_v24 = vpop.f32.mrb[8].mxu0  ;;  %2172 = vmatpush3.bf16.msra.mxu1 %v2404_v18 }
 0x186   : > { %v608_v25 = vpop.f32.mrb[9].mxu0  ;;  %2173 = vmatprep.subr.bf16.mxu1 %v2405_v23 }
 0x187   : > { %v2138_v26 = vpop.f32.mrb[10].mxu0 }
 0x188   : > { %v676_v27 = vpack.c.bf16 %v2138_v26, %v2137_v24  ;;  %v611_v28 = vpop.f32.mrb[11].mxu0 }
 0x189   : > { %v675_v29 = vpack.c.bf16 %v611_v28, %v608_v25  ;;  %2174 = vmatpush3.bf16.msra.mxu1 %v2405_v23  ;;  %v2416_v25 = vld [vmem:[%s3023_s6 + $0x50] sm:$0xff]  }
 0x18b   : > { %2159 = vmatprep.mubr.msk.bf16.mxu1 %vm711_vm2, %v675_v29 }
 0x18c   : > { %2160 = vmatmul.mubr.msk.bf16.gmra.mrb[8].mxu1 %vm711_vm2, %v676_v27 }
 0x18d   : > { %v2141_v30 = vpop.f32.mrb[12].mxu0 }
 0x18e   : > { %v624_v31 = vpop.f32.mrb[13].mxu0 }
 0x18f   : > { %v2142_v34 = vpop.f32.mrb[14].mxu0 }
 0x190   : > { %v678_v35 = vpack.c.bf16 %v2142_v34, %v2141_v30  ;;  %v627_v36 = vpop.f32.mrb[15].mxu0 }
 0x191   : > { %v677_v37 = vpack.c.bf16 %v627_v36, %v624_v31 }
 0x193   : > { %2163 = vmatprep.mubr.msk.bf16.mxu1 %vm711_vm2, %v677_v37 }
 0x194   : > { %2164 = vmatmul.mubr.msk.bf16.gmra.mrb[12].mxu1 %vm711_vm2, %v678_v35 }
 0x195   : > { %2175 = vmatprep.mubr.msk.bf16.mxu1 %vm711_vm2, %v655_v38 }
 0x19c   : > { %2176 = vmatmul.mubr.msk.bf16.vlgmr.msra.gmra.mrb[0].mxu1 %vm711_vm2, %v656_v43 }
 0x19d   : > { %2179 = vmatprep.mubr.msk.bf16.mxu1 %vm711_vm2, %v657_v44 }
 0x1a4   : > { %2180 = vmatmul.mubr.msk.bf16.gmra.mrb[4].mxu1 %vm711_vm2, %v658_v49  ;;  %v2419_v49 = vld [vmem:[%s3023_s6 + $0x68] sm:$0xff]  }
 0x1a5   : > { %2183 = vmatprep.mubr.msk.bf16.mxu1 %vm711_vm2, %v659_v50 }
 0x1ac   : > { %2184 = vmatmul.mubr.msk.bf16.gmra.mrb[8].mxu1 %vm711_vm2, %v660_v55 }
 0x1ad   : > { %2187 = vmatprep.mubr.msk.bf16.mxu1 %vm711_vm2, %v661_v56 }
 0x1b4   : > { %2188 = vmatmul.mubr.msk.bf16.gmra.mrb[12].mxu1 %vm711_vm2, %v662_v59 }
 0x26f   : > { %v2177_v0 = vpop.f32.mrb[0].mxu1 }
 0x270   : > { %v987_v1 = vadd.f32 %v2177_v0, %v2791_v63  ;;  %v915_v2 = vpop.f32.mrb[1].mxu1  ;;  %v2423_v0 = vld [vmem:[%s3023_s6 + $0x88] sm:$0xff]  }
 0x271   : > { %v985_v3 = vadd.f32 %v2791_v63, %v915_v2  ;;  %v2178_v4 = vpop.f32.mrb[2].mxu1  ;;  %v2425_v2 = vld [vmem:[%s3023_s6 + $0x98] sm:$0xff]  }
 0x272   : > { %v988_v5 = vadd.f32 %v2178_v4, %v2791_v63  ;;  %v918_v6 = vpop.f32.mrb[3].mxu1  ;;  %v1003_v8 = vmax.f32 %v987_v1, 0.0  ;;  %v2424_v1 = vld [vmem:[%s3023_s6 + $0x90] sm:$0xff]   ;;  %v2427_v4 = vld [vmem:[%s3023_s6 + $0xa8] sm:$0xff]  }
 0x273   : > { %v986_v7 = vadd.f32 %v2791_v63, %v918_v6  ;;  %v1001_v10 = vmax.f32 %v985_v3, 0.0  ;;  %v2426_v3 = vld [vmem:[%s3023_s6 + $0xa0] sm:$0xff]  }
 0x274   : > { %v1004_v9 = vmax.f32 %v988_v5, 0.0  ;;  %v1952_v5 = vld [vmem:[%s3024_s7] ss:$0 sm:$0xff] }
 0x275   : > { %v1002_v11 = vmax.f32 %v986_v7, 0.0 }
 0x276   : > { %v1018_v12 = vpack.c.bf16 %v1004_v9, %v1003_v8 }
 0x277   : > { %v1017_v13 = vpack.c.bf16 %v1002_v11, %v1001_v10  ;;  %v2181_v14 = vpop.f32.mrb[4].mxu1 }
 0x278   : > { %v991_v15 = vadd.f32 %v2181_v14, %v2791_v63  ;;  %v931_v16 = vpop.f32.mrb[5].mxu1 }
 0x279   : > { %v989_v18 = vadd.f32 %v2791_v63, %v931_v16  ;;  %v2182_v19 = vpop.f32.mrb[6].mxu1  ;;  %2207 = vmatprep.mubr.bf16.mxu0 %v1017_v13 }
 0x27a   : > { %v992_v20 = vadd.f32 %v2182_v19, %v2791_v63  ;;  %v934_v21 = vpop.f32.mrb[7].mxu1  ;;  %2208 = vmatmul.mubr.bf16.vlgmr.msra.gmra.mrb[16].mxu0 %v1018_v12  ;;  %v1007_v23 = vmax.f32 %v991_v15, 0.0 }
 0x27b   : > { %v990_v22 = vadd.f32 %v2791_v63, %v934_v21  ;;  %2224 = vmatpush3.bf16.msra.mxu0 %v2414_v62  ;;  %v1005_v26 = vmax.f32 %v989_v18, 0.0  ;;  %v2421_v62 = vld [vmem:[%s3023_s6 + $0x78] sm:$0xff]  }
 0x27c   : > { %v1008_v24 = vmax.f32 %v992_v20, 0.0  ;;  %2225 = vmatprep.subr.bf16.mxu0 %v2415_v17 }
 0x27d   : > { %v1006_v27 = vmax.f32 %v990_v22, 0.0 }
 0x27e   : > { %v1020_v28 = vpack.c.bf16 %v1008_v24, %v1007_v23 }
 0x27f   : > { %v1019_v29 = vpack.c.bf16 %v1006_v27, %v1005_v26  ;;  %v2185_v30 = vpop.f32.mrb[8].mxu1  ;;  %2226 = vmatpush3.bf16.msra.mxu0 %v2415_v17 }
 0x280   : > { %v995_v31 = vadd.f32 %v2185_v30, %v2791_v63  ;;  %v947_v32 = vpop.f32.mrb[9].mxu1  ;;  %2227 = vmatprep.subr.bf16.mxu0 %v2416_v25 }
 0x281   : > { %v993_v34 = vadd.f32 %v2791_v63, %v947_v32  ;;  %v2186_v35 = vpop.f32.mrb[10].mxu1  ;;  %2211 = vmatprep.mubr.bf16.mxu0 %v1019_v29 }
 0x282   : > { %v996_v36 = vadd.f32 %v2186_v35, %v2791_v63  ;;  %v950_v37 = vpop.f32.mrb[11].mxu1  ;;  %2212 = vmatmul.mubr.bf16.gmra.mrb[20].mxu0 %v1020_v28  ;;  %v1011_v39 = vmax.f32 %v995_v31, 0.0 }
 0x283   : > { %v994_v38 = vadd.f32 %v2791_v63, %v950_v37  ;;  %2228 = vmatpush3.bf16.msra.mxu0 %v2416_v25  ;;  %v1009_v42 = vmax.f32 %v993_v34, 0.0 }
 0x284   : > { %v1012_v40 = vmax.f32 %v996_v36, 0.0  ;;  %2229 = vmatprep.subr.bf16.mxu0 %v2417_v33 }
 0x285   : > { %v1010_v43 = vmax.f32 %v994_v38, 0.0 }
 0x286   : > { %v1022_v44 = vpack.c.bf16 %v1012_v40, %v1011_v39 }
 0x287   : > { %v1021_v45 = vpack.c.bf16 %v1010_v43, %v1009_v42  ;;  %v2189_v46 = vpop.f32.mrb[12].mxu1  ;;  %2230 = vmatpush3.bf16.msra.mxu0 %v2417_v33 }
 0x288   : > { %v999_v47 = vadd.f32 %v2189_v46, %v2791_v63  ;;  %v963_v48 = vpop.f32.mrb[13].mxu1  ;;  %2231 = vmatprep.subr.bf16.mxu0 %v2418_v41 }
 0x289   : > { %v997_v50 = vadd.f32 %v2791_v63, %v963_v48  ;;  %v2190_v51 = vpop.f32.mrb[14].mxu1  ;;  %2215 = vmatprep.mubr.bf16.mxu0 %v1021_v45 }
 0x28a   : > { %v1000_v52 = vadd.f32 %v2190_v51, %v2791_v63  ;;  %v966_v53 = vpop.f32.mrb[15].mxu1  ;;  %2216 = vmatmul.mubr.bf16.gmra.mrb[24].mxu0 %v1022_v44  ;;  %v1015_v55 = vmax.f32 %v999_v47, 0.0 }
 0x28b   : > { %v998_v54 = vadd.f32 %v2791_v63, %v966_v53  ;;  %2232 = vmatpush3.bf16.msra.mxu0 %v2418_v41  ;;  %v1013_v57 = vmax.f32 %v997_v50, 0.0  ;;  %v2422_v63 = vld [vmem:[%s3023_s6 + $0x80] sm:$0xff]  }
 0x28c   : > { %v1016_v56 = vmax.f32 %v1000_v52, 0.0  ;;  %2233 = vmatprep.subr.bf16.mxu0 %v2419_v49  ;;  %2255 = vmatprep.subr.bf16.mxu1 %v2422_v63 }
 0x28d   : > { %v1014_v58 = vmax.f32 %v998_v54, 0.0  ;;  %2256 = vmatpush3.bf16.msra.mxu1 %v2422_v63  ;;  %v2429_v63 = vld [vmem:[%s3023_s6 + $0xb8] sm:$0xff]  }
 0x28e   : > { %v1024_v59 = vpack.c.bf16 %v1016_v56, %v1015_v55  ;;  %2257 = vmatprep.subr.bf16.mxu1 %v2423_v0 }
 0x28f   : > { %v1023_v60 = vpack.c.bf16 %v1014_v58, %v1013_v57  ;;  %2234 = vmatpush3.bf16.msra.mxu0 %v2419_v49 }
 0x290   : > { %2235 = vmatprep.subr.bf16.mxu0 %v2420_v61 }
 0x291   : > { %2219 = vmatprep.mubr.bf16.mxu0 %v1023_v60  ;;  %2258 = vmatpush3.bf16.msra.mxu1 %v2423_v0  ;;  %v2430_v0 = vld [vmem:[%s3025_s8] sm:$0xff]  }
 0x292   : > { %2220 = vmatmul.mubr.bf16.gmra.mrb[28].mxu0 %v1024_v59  ;;  %2259 = vmatprep.subr.bf16.mxu1 %v2424_v1 }
 0x293   : > { %2236 = vmatpush3.bf16.msra.mxu0 %v2420_v61 }
 0x294   : > { %2237 = vmatprep.subr.bf16.mxu0 %v2421_v62 }
 0x295   : > { %2260 = vmatpush3.bf16.msra.mxu1 %v2424_v1  ;;  %v2431_v1 = vld [vmem:[%s3025_s8 + $0x8] sm:$0xff]  }
 0x296   : > { %2261 = vmatprep.subr.bf16.mxu1 %v2425_v2 }
 0x297   : > { %2238 = vmatpush3.bf16.msra.mxu0 %v2421_v62  ;;  %v2428_v62 = vld [vmem:[%s3023_s6 + $0xb0] sm:$0xff]  }
 0x298   : > { %2287 = vmatprep.subr.bf16.mxu0 %v2430_v0 }
 0x299   : > { %2262 = vmatpush3.bf16.msra.mxu1 %v2425_v2  ;;  %v2432_v2 = vld [vmem:[%s3025_s8 + $0x10] sm:$0xff]  }
 0x29a   : > { %2263 = vmatprep.subr.bf16.mxu1 %v2426_v3 }
 0x29d   : > { %2264 = vmatpush3.bf16.msra.mxu1 %v2426_v3  ;;  %v2869_v3 = vld [vmem:[%s3025_s8 + $0x18] sm:$0xff]  }
 0x29e   : > { %2265 = vmatprep.subr.bf16.mxu1 %v2427_v4 }
 0x2a1   : > { %2266 = vmatpush3.bf16.msra.mxu1 %v2427_v4  ;;  %v2875_v4 = vld [vmem:[%s3025_s8 + $0x20] sm:$0xff]  }
 0x2a2   : > { %2267 = vmatprep.subr.bf16.mxu1 %v2428_v62 }
 0x2a5   : > { %2268 = vmatpush3.bf16.msra.mxu1 %v2428_v62 }
 0x2a6   : > { %2269 = vmatprep.subr.bf16.mxu1 %v2429_v63 }
 0x2a9   : > { %2270 = vmatpush3.bf16.msra.mxu1 %v2429_v63  ;;  %v2436_v63 = vld [vmem:[%s3025_s8 + $0x30] sm:$0xff]  }
 0x2aa   : > { %2319 = vmatprep.subr.bf16.mxu1 %v2430_v0 }
 0x34d   : > { %v2209_v6 = vpop.f32.mrb[16].mxu0 }
 0x34e   : > { %v1139_v7 = vadd.f32 %v2209_v6, %v1952_v5  ;;  %v1130_v8 = vpop.f32.mrb[17].mxu0  ;;  %v2890_v6 = vld [vmem:[%s3024_s7 + $0x1] ss:$0 sm:$0xff] }
 0x34f   : > { %v1131_v9 = vadd.f32 %v1952_v5, %v1130_v8  ;;  %v2210_v10 = vpop.f32.mrb[18].mxu0 }
 0x350   : > { %v1142_v11 = vadd.f32 %v2210_v10, %v1952_v5  ;;  %v1133_v12 = vpop.f32.mrb[19].mxu0  ;;  %v1195_v14 = vmax.f32 %v1139_v7, 0.0 }
 0x351   : > { %v1134_v13 = vadd.f32 %v1952_v5, %v1133_v12  ;;  %v1193_v16 = vmax.f32 %v1131_v9, 0.0 }
 0x352   : > { %v1196_v15 = vmax.f32 %v1142_v11, 0.0 }
 0x353   : > { %v1194_v17 = vmax.f32 %v1134_v13, 0.0 }
 0x354   : > { %v1210_v18 = vpack.c.bf16 %v1196_v15, %v1195_v14 }
 0x355   : > { %v1209_v19 = vpack.c.bf16 %v1194_v17, %v1193_v16  ;;  %v2213_v20 = vpop.f32.mrb[20].mxu0 }
 0x356   : > { %v1155_v21 = vadd.f32 %v2213_v20, %v1952_v5  ;;  %v1146_v22 = vpop.f32.mrb[21].mxu0 }
 0x357   : > { %v1147_v23 = vadd.f32 %v1952_v5, %v1146_v22  ;;  %v2214_v24 = vpop.f32.mrb[22].mxu0  ;;  %2239 = vmatprep.mubr.bf16.mxu0 %v1209_v19 }
 0x358   : > { %v1158_v25 = vadd.f32 %v2214_v24, %v1952_v5  ;;  %v1149_v26 = vpop.f32.mrb[23].mxu0  ;;  %2240 = vmatmul.mubr.bf16.vlgmr.msra.gmra.mrb[32].mxu0 %v1210_v18  ;;  %v1199_v28 = vmax.f32 %v1155_v21, 0.0 }
 0x359   : > { %v1150_v27 = vadd.f32 %v1952_v5, %v1149_v26  ;;  %v1197_v30 = vmax.f32 %v1147_v23, 0.0  ;;  %2288 = vmatpush3.bf16.msra.mxu0 %v2430_v0 }
 0x35a   : > { %v1200_v29 = vmax.f32 %v1158_v25, 0.0  ;;  %2289 = vmatprep.subr.bf16.mxu0 %v2431_v1 }
 0x35b   : > { %v1198_v31 = vmax.f32 %v1150_v27, 0.0 }
 0x35c   : > { %v1212_v32 = vpack.c.bf16 %v1200_v29, %v1199_v28 }
 0x35d   : > { %v1211_v33 = vpack.c.bf16 %v1198_v31, %v1197_v30  ;;  %v2217_v34 = vpop.f32.mrb[24].mxu0  ;;  %2290 = vmatpush3.bf16.msra.mxu0 %v2431_v1 }
 0x35e   : > { %v1171_v35 = vadd.f32 %v2217_v34, %v1952_v5  ;;  %v1162_v36 = vpop.f32.mrb[25].mxu0  ;;  %2291 = vmatprep.subr.bf16.mxu0 %v2432_v2 }
 0x35f   : > { %v1163_v37 = vadd.f32 %v1952_v5, %v1162_v36  ;;  %v2218_v38 = vpop.f32.mrb[26].mxu0  ;;  %2243 = vmatprep.mubr.bf16.mxu0 %v1211_v33 }
 0x360   : > { %v1174_v39 = vadd.f32 %v2218_v38, %v1952_v5  ;;  %v1165_v40 = vpop.f32.mrb[27].mxu0  ;;  %2244 = vmatmul.mubr.bf16.gmra.mrb[36].mxu0 %v1212_v32  ;;  %v1203_v42 = vmax.f32 %v1171_v35, 0.0 }
 0x361   : > { %v1166_v41 = vadd.f32 %v1952_v5, %v1165_v40  ;;  %v1201_v44 = vmax.f32 %v1163_v37, 0.0  ;;  %2292 = vmatpush3.bf16.msra.mxu0 %v2432_v2 }
 0x362   : > { %v1204_v43 = vmax.f32 %v1174_v39, 0.0  ;;  %2293 = vmatprep.subr.bf16.mxu0 %v2869_v3 }
 0x363   : > { %v1202_v45 = vmax.f32 %v1166_v41, 0.0 }
 0x364   : > { %v1214_v46 = vpack.c.bf16 %v1204_v43, %v1203_v42 }
 0x365   : > { %v1213_v47 = vpack.c.bf16 %v1202_v45, %v1201_v44  ;;  %v2221_v48 = vpop.f32.mrb[28].mxu0  ;;  %2294 = vmatpush3.bf16.msra.mxu0 %v2869_v3 }
 0x366   : > { %v1187_v49 = vadd.f32 %v2221_v48, %v1952_v5  ;;  %v1178_v50 = vpop.f32.mrb[29].mxu0  ;;  %2295 = vmatprep.subr.bf16.mxu0 %v2875_v4 }
 0x367   : > { %v1179_v51 = vadd.f32 %v1952_v5, %v1178_v50  ;;  %v2222_v52 = vpop.f32.mrb[30].mxu0  ;;  %2247 = vmatprep.mubr.bf16.mxu0 %v1213_v47 }
 0x368   : > { %v1190_v53 = vadd.f32 %v2222_v52, %v1952_v5  ;;  %v1181_v54 = vpop.f32.mrb[31].mxu0  ;;  %2248 = vmatmul.mubr.bf16.gmra.mrb[40].mxu0 %v1214_v46  ;;  %v1207_v56 = vmax.f32 %v1187_v49, 0.0 }
 0x369   : > { %v1182_v55 = vadd.f32 %v1952_v5, %v1181_v54  ;;  %v1205_v58 = vmax.f32 %v1179_v51, 0.0  ;;  %v2882_v5 = vld [vmem:[%s3025_s8 + $0x28] sm:$0xff]   ;;  %2296 = vmatpush3.bf16.msra.mxu0 %v2875_v4 }
 0x36a   : > { %v1208_v57 = vmax.f32 %v1190_v53, 0.0  ;;  %2297 = vmatprep.subr.bf16.mxu0 %v2882_v5 }
 0x36b   : > { %v1206_v59 = vmax.f32 %v1182_v55, 0.0 }
 0x36c   : > { %v1216_v60 = vpack.c.bf16 %v1208_v57, %v1207_v56 }
 0x36d   : > { %v1215_v61 = vpack.c.bf16 %v1206_v59, %v1205_v58  ;;  %2298 = vmatpush3.bf16.msra.mxu0 %v2882_v5 }
 0x36e   : > { %2299 = vmatprep.subr.bf16.mxu0 %v2436_v63 }
 0x36f   : > { %2251 = vmatprep.mubr.bf16.mxu0 %v1215_v61 }
 0x370   : > { %2252 = vmatmul.mubr.bf16.gmra.mrb[44].mxu0 %v1216_v60 }
 0x371   : > { %2300 = vmatpush3.bf16.msra.mxu0 %v2436_v63 }
 0x42b   : > { %v2241_v7 = vpop.f32.mrb[32].mxu0 }
 0x42c   : > { %v1333_v8 = vadd.f32 %v2241_v7, %v2890_v6  ;;  %v1324_v9 = vpop.f32.mrb[33].mxu0 }
 0x42d   : > { %v1325_v10 = vadd.f32 %v2890_v6, %v1324_v9  ;;  %v2242_v11 = vpop.f32.mrb[34].mxu0 }
 0x42e   : > { %v1336_v12 = vadd.f32 %v2242_v11, %v2890_v6  ;;  %v1327_v13 = vpop.f32.mrb[35].mxu0  ;;  %v1389_v15 = vmax.f32 %v1333_v8, 0.0 }
 0x42f   : > { %v1328_v14 = vadd.f32 %v2890_v6, %v1327_v13  ;;  %v1387_v17 = vmax.f32 %v1325_v10, 0.0 }
 0x430   : > { %v1390_v16 = vmax.f32 %v1336_v12, 0.0 }
 0x431   : > { %v1388_v18 = vmax.f32 %v1328_v14, 0.0 }
 0x432   : > { %v1404_v19 = vpack.c.bf16 %v1390_v16, %v1389_v15 }
 0x433   : > { %v1403_v20 = vpack.c.bf16 %v1388_v18, %v1387_v17  ;;  %v2245_v21 = vpop.f32.mrb[36].mxu0 }
 0x434   : > { %v1349_v22 = vadd.f32 %v2245_v21, %v2890_v6  ;;  %v1340_v23 = vpop.f32.mrb[37].mxu0 }
 0x435   : > { %v1341_v24 = vadd.f32 %v2890_v6, %v1340_v23  ;;  %v2246_v25 = vpop.f32.mrb[38].mxu0  ;;  %2271 = vmatprep.mubr.bf16.mxu1 %v1403_v20 }
 0x436   : > { %v1352_v26 = vadd.f32 %v2246_v25, %v2890_v6  ;;  %v1343_v27 = vpop.f32.mrb[39].mxu0  ;;  %2272 = vmatmul.mubr.bf16.vlgmr.msra.gmra.mrb[16].mxu1 %v1404_v19  ;;  %v1393_v29 = vmax.f32 %v1349_v22, 0.0 }
 0x437   : > { %v1344_v28 = vadd.f32 %v2890_v6, %v1343_v27  ;;  %2327 = vmatpush3.bf16.msra.mxu1 %v2430_v0  ;;  %v1391_v31 = vmax.f32 %v1341_v24, 0.0  ;;  %v2437_v0 = vld [vmem:[%s3025_s8 + $0x38] sm:$0xff]  }
 0x438   : > { %v1394_v30 = vmax.f32 %v1352_v26, 0.0  ;;  %2320 = vmatprep.subr.bf16.mxu1 %v2431_v1  ;;  %2301 = vmatprep.subr.bf16.mxu0 %v2437_v0 }
 0x439   : > { %v1392_v32 = vmax.f32 %v1344_v28, 0.0  ;;  %2302 = vmatpush3.bf16.msra.mxu0 %v2437_v0 }
 0x43a   : > { %v1406_v33 = vpack.c.bf16 %v1394_v30, %v1393_v29 }
 0x43b   : > { %v1405_v34 = vpack.c.bf16 %v1392_v32, %v1391_v31  ;;  %v2249_v35 = vpop.f32.mrb[40].mxu0  ;;  %2328 = vmatpush3.bf16.msra.mxu1 %v2431_v1  ;;  %v2004_v1 = vld [vmem:[%s3024_s7 + $0x2] ss:$0 sm:$0xff] }
 0x43c   : > { %v1365_v36 = vadd.f32 %v2249_v35, %v2890_v6  ;;  %v1356_v37 = vpop.f32.mrb[41].mxu0  ;;  %2321 = vmatprep.subr.bf16.mxu1 %v2432_v2 }
 0x43d   : > { %v1357_v38 = vadd.f32 %v2890_v6, %v1356_v37  ;;  %v2250_v39 = vpop.f32.mrb[42].mxu0  ;;  %2275 = vmatprep.mubr.bf16.mxu1 %v1405_v34 }
 0x43e   : > { %v1368_v40 = vadd.f32 %v2250_v39, %v2890_v6  ;;  %v1359_v41 = vpop.f32.mrb[43].mxu0  ;;  %2276 = vmatmul.mubr.bf16.gmra.mrb[20].mxu1 %v1406_v33  ;;  %v1397_v43 = vmax.f32 %v1365_v36, 0.0 }
 0x43f   : > { %v1360_v42 = vadd.f32 %v2890_v6, %v1359_v41  ;;  %2329 = vmatpush3.bf16.msra.mxu1 %v2432_v2  ;;  %v1395_v45 = vmax.f32 %v1357_v38, 0.0 }
 0x440   : > { %v1398_v44 = vmax.f32 %v1368_v40, 0.0  ;;  %2322 = vmatprep.subr.bf16.mxu1 %v2869_v3 }
 0x441   : > { %v1396_v46 = vmax.f32 %v1360_v42, 0.0 }
 0x442   : > { %v1408_v47 = vpack.c.bf16 %v1398_v44, %v1397_v43 }
 0x443   : > { %v1407_v48 = vpack.c.bf16 %v1396_v46, %v1395_v45  ;;  %v2253_v49 = vpop.f32.mrb[44].mxu0  ;;  %2330 = vmatpush3.bf16.msra.mxu1 %v2869_v3 }
 0x444   : > { %v1381_v50 = vadd.f32 %v2253_v49, %v2890_v6  ;;  %v1372_v51 = vpop.f32.mrb[45].mxu0  ;;  %2323 = vmatprep.subr.bf16.mxu1 %v2875_v4 }
 0x445   : > { %v1373_v52 = vadd.f32 %v2890_v6, %v1372_v51  ;;  %v2254_v53 = vpop.f32.mrb[46].mxu0  ;;  %2279 = vmatprep.mubr.bf16.mxu1 %v1407_v48 }
 0x446   : > { %v1384_v54 = vadd.f32 %v2254_v53, %v2890_v6  ;;  %v1375_v55 = vpop.f32.mrb[47].mxu0  ;;  %2280 = vmatmul.mubr.bf16.gmra.mrb[24].mxu1 %v1408_v47  ;;  %v1401_v57 = vmax.f32 %v1381_v50, 0.0 }
 0x447   : > { %v1376_v56 = vadd.f32 %v2890_v6, %v1375_v55  ;;  %2331 = vmatpush3.bf16.msra.mxu1 %v2875_v4  ;;  %v1399_v59 = vmax.f32 %v1373_v52, 0.0 }
 0x448   : > { %v1402_v58 = vmax.f32 %v1384_v54, 0.0  ;;  %2324 = vmatprep.subr.bf16.mxu1 %v2882_v5 }
 0x449   : > { %v1400_v60 = vmax.f32 %v1376_v56, 0.0 }
 0x44a   : > { %v1410_v61 = vpack.c.bf16 %v1402_v58, %v1401_v57  ;;  %v2926_v58 = vld [vmem:[%s3026_s9] ss:$0 sm:$0xff] }
 0x44b   : > { %v1409_v62 = vpack.c.bf16 %v1400_v60, %v1399_v59  ;;  %2332 = vmatpush3.bf16.msra.mxu1 %v2882_v5 }
 0x44c   : > { %2325 = vmatprep.subr.bf16.mxu1 %v2436_v63 }
 0x44d   : > { %2283 = vmatprep.mubr.bf16.mxu1 %v1409_v62 }
 0x44e   : > { %2284 = vmatmul.mubr.bf16.gmra.mrb[28].mxu1 %v1410_v61 }
 0x44f   : > { %2333 = vmatpush3.bf16.msra.mxu1 %v2436_v63 }
 0x450   : > { %2326 = vmatprep.subr.bf16.mxu1 %v2437_v0 }
 0x453   : > { %2334 = vmatpush3.bf16.msra.mxu1 %v2437_v0 }
 0x509   : > { %v2273_v2 = vpop.f32.mrb[16].mxu1 }
 0x50a   : > { %v1527_v3 = vadd.f32 %v2273_v2, %v2004_v1  ;;  %v1518_v4 = vpop.f32.mrb[17].mxu1 }
 0x50b   : > { %v1519_v5 = vadd.f32 %v2004_v1, %v1518_v4  ;;  %v2274_v6 = vpop.f32.mrb[18].mxu1 }
 0x50c   : > { %v1530_v7 = vadd.f32 %v2274_v6, %v2004_v1  ;;  %v1521_v8 = vpop.f32.mrb[19].mxu1  ;;  %v1583_v10 = vmax.f32 %v1527_v3, 0.0 }
 0x50d   : > { %v1522_v9 = vadd.f32 %v2004_v1, %v1521_v8  ;;  %v1581_v12 = vmax.f32 %v1519_v5, 0.0 }
 0x50e   : > { %v1584_v11 = vmax.f32 %v1530_v7, 0.0 }
 0x50f   : > { %v1582_v13 = vmax.f32 %v1522_v9, 0.0 }
 0x510   : > { %v1598_v14 = vpack.c.bf16 %v1584_v11, %v1583_v10 }
 0x511   : > { %v1597_v15 = vpack.c.bf16 %v1582_v13, %v1581_v12  ;;  %v2277_v16 = vpop.f32.mrb[20].mxu1 }
 0x512   : > { %v1543_v17 = vadd.f32 %v2277_v16, %v2004_v1  ;;  %v1534_v18 = vpop.f32.mrb[21].mxu1 }
 0x513   : > { %v1535_v19 = vadd.f32 %v2004_v1, %v1534_v18  ;;  %v2278_v20 = vpop.f32.mrb[22].mxu1  ;;  %2303 = vmatprep.mubr.bf16.mxu0 %v1597_v15 }
 0x514   : > { %v1546_v21 = vadd.f32 %v2278_v20, %v2004_v1  ;;  %v1537_v22 = vpop.f32.mrb[23].mxu1  ;;  %2304 = vmatmul.mubr.bf16.vlgmr.msra.gmra.mrb[48].mxu0 %v1598_v14  ;;  %v1587_v24 = vmax.f32 %v1543_v17, 0.0 }
 0x515   : > { %v1538_v23 = vadd.f32 %v2004_v1, %v1537_v22  ;;  %v1585_v26 = vmax.f32 %v1535_v19, 0.0 }
 0x516   : > { %v1588_v25 = vmax.f32 %v1546_v21, 0.0 }
 0x517   : > { %v1586_v27 = vmax.f32 %v1538_v23, 0.0 }
 0x518   : > { %v1600_v28 = vpack.c.bf16 %v1588_v25, %v1587_v24 }
 0x519   : > { %v1599_v29 = vpack.c.bf16 %v1586_v27, %v1585_v26  ;;  %v2281_v30 = vpop.f32.mrb[24].mxu1 }
 0x51a   : > { %v1559_v31 = vadd.f32 %v2281_v30, %v2004_v1  ;;  %v1550_v32 = vpop.f32.mrb[25].mxu1 }
 0x51b   : > { %v1551_v33 = vadd.f32 %v2004_v1, %v1550_v32  ;;  %v2282_v34 = vpop.f32.mrb[26].mxu1  ;;  %2307 = vmatprep.mubr.bf16.mxu0 %v1599_v29 }
 0x51c   : > { %v1562_v35 = vadd.f32 %v2282_v34, %v2004_v1  ;;  %v1553_v36 = vpop.f32.mrb[27].mxu1  ;;  %2308 = vmatmul.mubr.bf16.gmra.mrb[52].mxu0 %v1600_v28  ;;  %v1591_v38 = vmax.f32 %v1559_v31, 0.0 }
 0x51d   : > { %v1554_v37 = vadd.f32 %v2004_v1, %v1553_v36  ;;  %v1589_v40 = vmax.f32 %v1551_v33, 0.0 }
 0x51e   : > { %v1592_v39 = vmax.f32 %v1562_v35, 0.0 }
 0x51f   : > { %v1590_v41 = vmax.f32 %v1554_v37, 0.0 }
 0x520   : > { %v1602_v42 = vpack.c.bf16 %v1592_v39, %v1591_v38 }
 0x521   : > { %v1601_v43 = vpack.c.bf16 %v1590_v41, %v1589_v40  ;;  %v2285_v44 = vpop.f32.mrb[28].mxu1 }
 0x522   : > { %v1575_v45 = vadd.f32 %v2285_v44, %v2004_v1  ;;  %v1566_v46 = vpop.f32.mrb[29].mxu1 }
 0x523   : > { %v1567_v47 = vadd.f32 %v2004_v1, %v1566_v46  ;;  %v2286_v48 = vpop.f32.mrb[30].mxu1  ;;  %2311 = vmatprep.mubr.bf16.mxu0 %v1601_v43 }
 0x524   : > { %v1578_v49 = vadd.f32 %v2286_v48, %v2004_v1  ;;  %v1569_v50 = vpop.f32.mrb[31].mxu1  ;;  %2312 = vmatmul.mubr.bf16.gmra.mrb[56].mxu0 %v1602_v42  ;;  %v1595_v52 = vmax.f32 %v1575_v45, 0.0 }
 0x525   : > { %v1570_v51 = vadd.f32 %v2004_v1, %v1569_v50  ;;  %v1593_v54 = vmax.f32 %v1567_v47, 0.0 }
 0x526   : > { %v1596_v53 = vmax.f32 %v1578_v49, 0.0 }
 0x527   : > { %v1594_v55 = vmax.f32 %v1570_v51, 0.0 }
 0x528   : > { %v1604_v56 = vpack.c.bf16 %v1596_v53, %v1595_v52 }
 0x529   : > { %v1603_v57 = vpack.c.bf16 %v1594_v55, %v1593_v54 }
 0x52b   : > { %2315 = vmatprep.mubr.bf16.mxu1 %v1603_v57 }
 0x52c   : > { %2316 = vmatmul.mubr.bf16.vlgmr.msra.gmra.mrb[32].mxu1 %v1604_v56 }
 0x5e7   : > { %v2305_v59 = vpop.f32.mrb[48].mxu0 }
 0x5e8   : > { %v1719_v60 = vadd.f32 %v2305_v59, %v2926_v58  ;;  %v1710_v61 = vpop.f32.mrb[49].mxu0 }
 0x5e9   : > { %v1711_v62 = vadd.f32 %v2926_v58, %v1710_v61  ;;  %v2306_v63 = vpop.f32.mrb[50].mxu0 }
 0x5ea   : > { %2438 = vtanh.f32 %v1719_v60  ;;  %v1722_v0 = vadd.f32 %v2306_v63, %v2926_v58  ;;  %v1713_v1 = vpop.f32.mrb[51].mxu0 }
 0x5eb   : > { %2440 = vtanh.f32 %v1711_v62  ;;  %v1714_v2 = vadd.f32 %v2926_v58, %v1713_v1 }
 0x5ec   : > { %2442 = vtanh.f32 %v1722_v0 }
 0x5ed   : > { %2444 = vtanh.f32 %v1714_v2 }
 0x5ef   : > { %v2309_v3 = vpop.f32.mrb[52].mxu0 }
 0x5f0   : > { %v1735_v4 = vadd.f32 %v2309_v3, %v2926_v58  ;;  %v1726_v5 = vpop.f32.mrb[53].mxu0 }
 0x5f1   : > { %v1727_v6 = vadd.f32 %v2926_v58, %v1726_v5  ;;  %v2310_v7 = vpop.f32.mrb[54].mxu0 }
 0x5f2   : > { %2446 = vtanh.f32 %v1735_v4  ;;  %v1738_v8 = vadd.f32 %v2310_v7, %v2926_v58  ;;  %v1729_v9 = vpop.f32.mrb[55].mxu0 }
 0x5f3   : > { %2448 = vtanh.f32 %v1727_v6  ;;  %v1730_v10 = vadd.f32 %v2926_v58, %v1729_v9 }
 0x5f4   : > { %v2439_v11 = vpop.eup %2438  ;;  %2450 = vtanh.f32 %v1738_v8 }
 0x5f5   : > { %v2441_v12 = vpop.eup %2440  ;;  %1791 = vst [vmem:[%s2939_s20 + $0x10] sm:$0xff] %v2439_v11  ;;  %2452 = vtanh.f32 %v1730_v10 }
 0x5f6   : > { %v2443_v13 = vpop.eup %2442  ;;  %1789 = vst [vmem:[%s2939_s20] sm:$0xff] %v2441_v12 }
 0x5f7   : > { %v2445_v14 = vpop.eup %2444  ;;  %1792 = vst [vmem:[%s2939_s20 + $0x18] sm:$0xff] %v2443_v13  ;;  %v2313_v15 = vpop.f32.mrb[56].mxu0 }
 0x5f8   : > { %1790 = vst [vmem:[%s2939_s20 + $0x8] sm:$0xff] %v2445_v14  ;;  %v1751_v16 = vadd.f32 %v2313_v15, %v2926_v58  ;;  %v1742_v17 = vpop.f32.mrb[57].mxu0 }
 0x5f9   : > { %v1743_v18 = vadd.f32 %v2926_v58, %v1742_v17  ;;  %v2314_v19 = vpop.f32.mrb[58].mxu0 }
 0x5fa   : > { %2454 = vtanh.f32 %v1751_v16  ;;  %v1754_v20 = vadd.f32 %v2314_v19, %v2926_v58  ;;  %v1745_v21 = vpop.f32.mrb[59].mxu0 }
 0x5fb   : > { %2456 = vtanh.f32 %v1743_v18  ;;  %v1746_v22 = vadd.f32 %v2926_v58, %v1745_v21 }
 0x5fc   : > { %v2447_v23 = vpop.eup %2446  ;;  %2458 = vtanh.f32 %v1754_v20 }
 0x5fd   : > { %v2449_v24 = vpop.eup %2448  ;;  %1795 = vst [vmem:[%s2939_s20 + $0x30] sm:$0xff] %v2447_v23  ;;  %2460 = vtanh.f32 %v1746_v22 }
 0x5fe   : > { %v2451_v25 = vpop.eup %2450  ;;  %1793 = vst [vmem:[%s2939_s20 + $0x20] sm:$0xff] %v2449_v24 }
 0x5ff   : > { %v2453_v26 = vpop.eup %2452  ;;  %1796 = vst [vmem:[%s2939_s20 + $0x38] sm:$0xff] %v2451_v25  ;;  %v2317_v27 = vpop.f32.mrb[32].mxu1 }
 0x600   : > { %1794 = vst [vmem:[%s2939_s20 + $0x28] sm:$0xff] %v2453_v26  ;;  %v1767_v28 = vadd.f32 %v2317_v27, %v2926_v58  ;;  %v1758_v29 = vpop.f32.mrb[33].mxu1 }
 0x601   : > { %v1759_v30 = vadd.f32 %v2926_v58, %v1758_v29  ;;  %v2318_v31 = vpop.f32.mrb[34].mxu1 }
 0x602   : > { %2462 = vtanh.f32 %v1767_v28  ;;  %v1770_v32 = vadd.f32 %v2318_v31, %v2926_v58  ;;  %v1761_v33 = vpop.f32.mrb[35].mxu1 }
 0x603   : > { %2464 = vtanh.f32 %v1759_v30  ;;  %v1762_v34 = vadd.f32 %v2926_v58, %v1761_v33 }
 0x604   : > { %v2455_v35 = vpop.eup %2454  ;;  %2466 = vtanh.f32 %v1770_v32 }
 0x605   : > { %v2457_v36 = vpop.eup %2456  ;;  %1799 = vst [vmem:[%s2939_s20 + $0x50] sm:$0xff] %v2455_v35  ;;  %2468 = vtanh.f32 %v1762_v34 }
 0x606   : > { %v2459_v37 = vpop.eup %2458  ;;  %1797 = vst [vmem:[%s2939_s20 + $0x40] sm:$0xff] %v2457_v36 }
 0x607   : > { %v2461_v38 = vpop.eup %2460  ;;  %1800 = vst [vmem:[%s2939_s20 + $0x58] sm:$0xff] %v2459_v37 }
 0x608   : > { %1798 = vst [vmem:[%s2939_s20 + $0x48] sm:$0xff] %v2461_v38 }
 0x60c   : > { %v2463_v39 = vpop.eup %2462 }
 0x60d   : > { %v2465_v40 = vpop.eup %2464  ;;  %1803 = vst [vmem:[%s2939_s20 + $0x70] sm:$0xff] %v2463_v39 }
 0x60e   : > { %v2467_v41 = vpop.eup %2466  ;;  %1801 = vst [vmem:[%s2939_s20 + $0x60] sm:$0xff] %v2465_v40 }
 0x60f   : > { %v2469_v42 = vpop.eup %2468  ;;  %1804 = vst [vmem:[%s2939_s20 + $0x78] sm:$0xff] %v2467_v41 }
 0x610   : > { %1802 = vst [vmem:[%s2939_s20 + $0x68] sm:$0xff] %v2469_v42 }
 0x611   : > { %2483 = shalt.err (!%p2480_p3)
}
 0x612   : > { %s2484_s12 = scalar_lea.hbm %s2967_s28, 2048  ;;  %s2488_s26 = scalar_lea.hbm %s3027_s10, 4096 }
 0x613   : > { %p2485_p4 = scmp.ne.s32.totalorder %s2967_s28, %s2484_s12  ;;  %p2489_p9 = scmp.lt.u32.totalorder %s2967_s28, %s3027_s10 }
 0x614   : > { %p2490_p10 = scmp.lt.u32.totalorder %s2488_s26, %s2484_s12  ;;  %p2492_p12 = scmp.lt.u32.totalorder %s2484_s12, %s2967_s28 }
 0x615   : > { %p2486_p7 = pnand %p2485_p4, %p2632_p5 }
 0x616   : > { %p2491_p11 = por %p2490_p10, %p2489_p9 }
 0x617   : > { %p2487_p8 = pneg %p2486_p7 }
 0x618   : > { %p2493_p13 = por %p2492_p12, %p2491_p11 }
 0x61a   : > { %p2494_p0 = pnand %p2493_p13, %p2487_p8 }
 0x61c   : > { %2497 = shalt.err (!%p2494_p0)
}
 0x61d   : > { %s2537_s29 = smov 128   ;;  %s2538_s11 = smov 8  }
 0x61e   : > { %2352 = dma.vmem_to_hbm [thread:$0]  (%p2632_p5), %s2969_s25, 2048, %s2967_s28, %s2976_s17, %s2537_s29, %s2537_s29, %s2538_s11  }
 0x61f PF: > { %p2358_p1 = scmp.ge.s32.totalorder %s2532_s16, 2  ;;  %s1834_s18 = sand.u32 1, %s2520_s13  }
 0x620   : > { %s1835_s12 = scalar_lea.sflag [#allocation3], %s1834_s18 }
 0x621   : > { %p2355_p2 = pnand %p2358_p1, %p2636_p6 }
 0x623   : > { %2515 = dma.done.wait (!%p2355_p2), %s1835_s12, 2048  }
 0x624   : > { %2517 = vsyncadd (!%p2355_p2), %s1835_s12, 4294965248  ;;  %p20_p3 = scmp.ge.s32.totalorder %s2619_s19, 4   ;;  %s3030_s13 = smov %s2524_s14 }
 0x625   : > { %s3031_s14 = smov %s2528_s15  ;;  %s3032_s15 = smov %s2630_s22 }
 0x626   : > { %s3033_s16 = smov %s2619_s19  ;;  %22 = sbr.rel (!%p20_p3) target bundleno = 3 (0x3), region = 102 }
 0x62d   :  { %1840 = vsyncpa [#allocation3], 1 }
 0x62e   :  { %1842 = vsyncpa [#allocation3 + $0x1], 1 }

</bundles_post_ra>
